<compile_context>
chip_gen: v6e
topology: v6e:2x2x1
jax: 0.10.0
libtpu: 0.0.40
codegen_flags: <defaults>
</compile_context>

<pallas_src>
import math

import jax
import jax.numpy as jnp
from jax.experimental import pallas as pl
from jax.experimental.pallas import tpu as pltpu


def _sinusoidal_pos_emb_kernel(tbl_ref, x_ref, o_ref):
    # tbl_ref: (2, dim) f32   row 0 = [freqs | freqs], row 1 = [0...0 | pi/2...pi/2]
    # x_ref  : (tile_b, 1) f32 timestep column
    # o_ref  : (tile_b, dim) output block
    freq = tbl_ref[0:1, :]    # (1, dim)  -- static slices, zero-cost views
    phase = tbl_ref[1:2, :]   # (1, dim)
    # One fused multiply-add + one sin per output element; cos half comes from
    # the pi/2 phase offset, so the result is already lane-dense [sin | cos].
    o_ref[...] = jnp.sin(x_ref[...] * freq + phase).astype(o_ref.dtype)


def _round8(n):
    return max(8, ((n + 7) // 8) * 8)


def sinusoidal_pos_emb(
    x,
    dim,
    *,
    out_dtype=jnp.float32,
    max_tile_rows=1024,
    vmem_tile_budget_bytes=8 << 20,
):
    """Pallas TPU implementation of SinusoidalPosEmb.forward.

    x   : (B,) timesteps (any float/int dtype; computed in f32)
    dim : embedding dimension (even, >= 4)
    returns (B, dim) array of `out_dtype` (default float32, matching PyTorch)
    """
    assert dim % 2 == 0 and dim >= 4, "dim must be even and >= 4"
    half_dim = dim // 2
    neg_log_scale = -(math.log(10000.0) / (half_dim - 1))

    (b,) = x.shape
    x2 = x.astype(jnp.float32).reshape(b, 1)

    # Hoisted frequency/phase table, built once (trace-time constants for XLA).
    freqs = jnp.exp(
        jnp.arange(half_dim, dtype=jnp.float32) * jnp.float32(neg_log_scale)
    )
    freq2 = jnp.concatenate([freqs, freqs])                              # (dim,)
    phase = jnp.concatenate(
        [jnp.zeros((half_dim,), jnp.float32),
         jnp.full((half_dim,), jnp.pi / 2, dtype=jnp.float32)]
    )                                                                    # (dim,)
    tbl = jnp.stack([freq2, phase])                                      # (2, dim)

    # Row tile: multiple of 8 (sublane rule).  Capped by
    #  (a) max_tile_rows,
    #  (b) a VMEM byte budget (~6x the double-buffered output-block bytes per
    #      row, safe on v7x's 64 MiB VMEM),
    #  (c) cdiv(B, 2) so large B always yields >= 2 "parallel" grid blocks
    #      (both v7x TensorCores get work; no cost on v5e/v6e).
    bytes_per_row = dim * 4 * 6
    byte_cap = _round8(max(8, vmem_tile_budget_bytes // bytes_per_row))
    two_way = _round8(pl.cdiv(b, 2))
    tile_b = max(8, min(max_tile_rows, byte_cap, two_way))
    grid = (pl.cdiv(b, tile_b),)

    out_itemsize = jnp.dtype(out_dtype).itemsize
    out = pl.pallas_call(
        _sinusoidal_pos_emb_kernel,
        out_shape=jax.ShapeDtypeStruct((b, dim), out_dtype),
        grid=grid,
        in_specs=[
            # Tiny table: same block every step -> stays VMEM-resident.
            pl.BlockSpec((2, dim), lambda i: (0, 0)),
            pl.BlockSpec((tile_b, 1), lambda i: (i, 0)),
        ],
        # Last dim equals the full array dim, so ragged boundary rows are
        # handled by Pallas write-masking (no wrapper pad / out[:b] slice).
        out_specs=pl.BlockSpec((tile_b, dim), lambda i: (i, 0)),
        compiler_params=pltpu.CompilerParams(
            dimension_semantics=("parallel",),
            vmem_limit_bytes=32 * 1024 * 1024,
        ),
        cost_estimate=pl.CostEstimate(
            flops=2 * b * dim,                                   # mul + add
            transcendentals=b * dim,                             # one sin/elem
            bytes_accessed=b * 4 + 2 * dim * 4 + b * dim * out_itemsize,
        ),
    )(tbl, x2)
    return out


class SinusoidalPosEmb:
    """JAX/Pallas analogue of the PyTorch SinusoidalPosEmb module."""

    def __init__(self, dim):
        self.dim = dim

    def __call__(self, x):
        return sinusoidal_pos_emb(x, self.dim)


def _reference(x, dim):
    # Pure-JAX mirror of the PyTorch forward (for correctness checking).
    half_dim = dim // 2
    emb = math.log(10000.0) / (half_dim - 1)
    emb = jnp.exp(jnp.arange(half_dim, dtype=jnp.float32) * -emb)
    emb = x.astype(jnp.float32)[:, None] * emb[None, :]
    return jnp.concatenate([jnp.sin(emb), jnp.cos(emb)], axis=-1)


if __name__ == "__main__":
    key = jax.random.PRNGKey(0)

    # Small shapes consistent with a diffusion time embedding: batch of
    # timesteps (B,) -> (B, dim).  Second case exercises a ragged boundary
    # block (B not a multiple of 8) and a wider embedding.
    for (b, dim) in [(2, 32), (9, 128)]:
        k = jax.random.fold_in(key, b * 1000 + dim)
        x = jax.random.uniform(k, (b,), dtype=jnp.float32) * 1000.0

        mod = SinusoidalPosEmb(dim)
        out = jax.block_until_ready(mod(x))
        ref = _reference(x, dim)

        assert out.shape == (b, dim) and out.dtype == jnp.float32
        # atol=1e-4: the cos half is computed as sin(a + pi/2); the f32
        # rounding of (a + pi/2) for arguments up to ~1000 contributes a few
        # ulp-of-1000 (~3e-5) of absolute difference vs. calling cos(a).
        assert jnp.allclose(out, ref, atol=1e-4, rtol=1e-5), (
            f"mismatch for B={b}, dim={dim}"
        )

    print("KERNEL_OK")
</pallas_src>

<mosaic_0001>
module attributes {stable_mosaic.version = 11 : i64} {
  func.func @_sinusoidal_pos_emb_kernel(%arg0: i32, %arg1: memref<2x32xf32, #tpu.memory_space<vmem>>, %arg2: memref<8x1xf32, #tpu.memory_space<vmem>>, %arg3: memref<8x32xf32, #tpu.memory_space<vmem>>) attributes {dimension_semantics = [#tpu.dimension_semantics<parallel>], iteration_bounds = array<i64: 1>, scalar_prefetch = 0 : i64, scratch_operands = 0 : i64, tpu.core_type = #tpu.core_type<tc>, window_params = [{pipeline_mode = #tpu.pipeline_mode<synchronous>, transform_indices = @transform_0, window_bounds = array<i64: 2, 32>}, {transform_indices = @transform_1, window_bounds = array<i64: 8, 1>}, {transform_indices = @transform_2, window_bounds = array<i64: 8, 32>}]} {
    %c0 = arith.constant 0 : index
    %c0_0 = arith.constant 0 : index
    %0 = vector.load %arg1[%c0, %c0_0] : memref<2x32xf32, #tpu.memory_space<vmem>>, vector<1x32xf32>
    %c1 = arith.constant 1 : index
    %c0_1 = arith.constant 0 : index
    %1 = vector.load %arg1[%c1, %c0_1] : memref<2x32xf32, #tpu.memory_space<vmem>>, vector<1x32xf32>
    %c0_2 = arith.constant 0 : index
    %c0_3 = arith.constant 0 : index
    %2 = vector.load %arg2[%c0_2, %c0_3] : memref<8x1xf32, #tpu.memory_space<vmem>>, vector<8x1xf32>
    %3 = vector.broadcast %2 : vector<8x1xf32> to vector<8x32xf32>
    %4 = vector.broadcast %0 : vector<1x32xf32> to vector<8x32xf32>
    %5 = arith.mulf %3, %4 : vector<8x32xf32>
    %6 = vector.broadcast %1 : vector<1x32xf32> to vector<8x32xf32>
    %7 = arith.addf %5, %6 : vector<8x32xf32>
    %8 = math.sin %7 : vector<8x32xf32>
    %c0_4 = arith.constant 0 : index
    %c0_5 = arith.constant 0 : index
    %9 = vector.load %arg3[%c0_4, %c0_5] : memref<8x32xf32, #tpu.memory_space<vmem>>, vector<8x32xf32>
    tpu.vector_store %arg3[%c0_4, %c0_5], %8 {strides = array<i32>} : memref<8x32xf32, #tpu.memory_space<vmem>>, vector<8x32xf32>,
    return
  }
  func.func @transform_0(%arg0: i32) -> (i32, i32) {
    %c0_i32 = arith.constant 0 : i32
    %c0_i32_0 = arith.constant 0 : i32
    %c0_i32_1 = arith.constant 0 : i32
    return %c0_i32, %c0_i32_0 : i32, i32
  }
  func.func @transform_1(%arg0: i32) -> (i32, i32) {
    %c0_i32 = arith.constant 0 : i32
    %c0_i32_0 = arith.constant 0 : i32
    return %arg0, %c0_i32 : i32, i32
  }
  func.func @transform_2(%arg0: i32) -> (i32, i32) {
    %c0_i32 = arith.constant 0 : i32
    %c0_i32_0 = arith.constant 0 : i32
    return %arg0, %c0_i32 : i32, i32
  }
}

</mosaic_0001>

<bundles_post_ra>
// kernel: tpu_custom_call.1
= control target key start
LH: loop header
LB: loop body
LE: loop exit
PB: predicated region body
PF: predicated region fallthrough
CT: control target
= control target key end

     0   :  { %v199_v1 = vmov 0   ;;  %s257_s0 = inlined_call_operand.vmem [shape: f32[2,32], index: 0, kind: input, shape index: {}]   ;;  %s258_s1 = inlined_call_operand.vmem [shape: f32[2,1], index: 1, kind: input, shape index: {}]   ;;  %s259_s2 = inlined_call_operand.hbm [shape: f32[2,32], index: 2, kind: output, shape index: {}]  }
   0x1   :  { %v14_v0 = vld [vmem:[%s258_s1] sm:$0xff]  ;;  %172 = vset.pattern.permute.xlu0 %v199_v1 }
   0x2   :  { %17 = vperm.xlu0 %172, %v14_v0  }
   0x3   :  { %7 = vsyncpa [#allocation3], 0  ;;  %v152_v2 = vld [vmem:[%s257_s0] ss:$0 sm:$0xff]  ;;  %v153_v4 = vld [vmem:[%s257_s0 + $0x1] ss:$0 sm:$0xff] }
   0x4   :  { %v200_v17 = vmov 683565275   ;;  %v201_v19 = vmov 2475754826   ;;  %v202_v22 = vmov 2131351028  }
   0x5   :  { %v203_v25 = vmov 2102212464   ;;  %v204_v28 = vmov 920167782   ;;  %v205_v31 = vmov 1326507024  }
   0x6   :  { %vm134_vm11 = vcmask 261120  }
  0x7d   :  { %v18_v3 = vpop.permute.xlu0 %17 }
  0x7e   :  { %v24_v5 = vmul.f32 %v152_v2, %v18_v3 }
  0x80   :  { %v233_v6 = vadd.f32 %v153_v4, %v24_v5 }
  0x82   :  { %v33_v7 = vand.u32 2139095040, %v233_v6  ;;  %v30_v11 = vand.u32 2147483647, %v233_v6  ;;  %vm32_vm7 = vcmp.lt.s32.totalorder %v233_v6, 0  ;;  %vm122_vm13 = vweird.f32 %v233_v6 }
  0x84   :  { %v34_v8 = vshrl.u32 %v33_v7, 23  ;;  %v37_v14 = vand.u32 8388607, %v30_v11  ;;  %vm31_vm8 = vcmp.le.f32.partialorder %v30_v11, 0.7853982 }
  0x86   :  { %v154_v9 = vadd.s32 4294967169, %v34_v8  ;;  %v38_v33 = vor.u32 8388608, %v37_v14 }
  0x88   :  { %v40_v10 = vadd.s32 1, %v154_v9  ;;  %v78_v47 = vshll.u32 %v38_v33, 8 }
  0x8a   :  { %vm41_vm0 = vcmp.gt.s32.totalorder %v40_v10, 0 }
  0x8b   :  { %v42_v12 = vsel %vm41_vm0, %v40_v10, 0 }
  0x8c   :  { %v44_v13 = vand.u32 31, %v42_v12  ;;  %v43_v16 = vshrl.u32 %v42_v12, 5 }
  0x8e   :  { %v45_v15 = vsub.s32 32, %v44_v13  ;;  %v47_v18 = vshll.u32 %v200_v17, %v44_v13  ;;  %v50_v20 = vshll.u32 %v201_v19, %v44_v13  ;;  %v53_v24 = vshll.u32 %v202_v22, %v44_v13 }
  0x8f   :  { %v56_v27 = vshll.u32 %v203_v25, %v44_v13  ;;  %v59_v30 = vshll.u32 %v204_v28, %v44_v13  ;;  %vm62_vm1 = vcmp.lt.s32.totalorder %v43_v16, 1  ;;  %vm65_vm2 = vcmp.lt.s32.totalorder %v43_v16, 4 }
  0x90   :  { %v48_v21 = vshrl.u32 %v201_v19, %v45_v15  ;;  %v51_v23 = vshrl.u32 %v202_v22, %v45_v15  ;;  %v54_v26 = vshrl.u32 %v203_v25, %v45_v15  ;;  %v57_v29 = vshrl.u32 %v204_v28, %v45_v15 }
  0x91   :  { %v60_v32 = vshrl.u32 %v205_v31, %v45_v15  ;;  %v46_v42 = vshrl.u32 %v200_v17, %v45_v15  ;;  %vm64_vm3 = vcmp.lt.s32.totalorder %v43_v16, 3  ;;  %vm63_vm4 = vcmp.lt.s32.totalorder %v43_v16, 2 }
  0x92   :  { %v49_v34 = vor.u32 %v48_v21, %v47_v18  ;;  %v52_v35 = vor.u32 %v51_v23, %v50_v20  ;;  %v55_v36 = vor.u32 %v54_v26, %v53_v24  ;;  %v58_v37 = vor.u32 %v57_v29, %v56_v27 }
  0x93   :  { %v61_v38 = vor.u32 %v60_v32, %v59_v30 }
  0x94   :  { %v67_v39 = vsel %vm65_vm2, %v55_v36, 2102212464  ;;  %v70_v40 = vsel %vm62_vm1, %v49_v34, %v52_v35  ;;  %v74_v41 = vsel %vm62_vm1, %v52_v35, %v55_v36  ;;  %v71_v43 = vsel %vm65_vm2, %v58_v37, 920167782 }
  0x95   :  { %v75_v44 = vsel %vm65_vm2, %v61_v38, 1326507024  ;;  %v72_v45 = vsel %vm64_vm3, %v55_v36, %v71_v43  ;;  %v66_v48 = vsel %vm62_vm1, %v46_v42, %v49_v34  ;;  %v68_v49 = vsel %vm64_vm3, %v52_v35, %v67_v39 }
  0x96   :  { %v76_v46 = vsel %vm64_vm3, %v58_v37, %v75_v44  ;;  %v73_v50 = vsel %vm63_vm4, %v70_v40, %v72_v45  ;;  %v69_v56 = vsel %vm63_vm4, %v66_v48, %v68_v49 }
  0x97   :  { %v77_v51 = vsel %vm63_vm4, %v74_v41, %v76_v46  ;;  %v242_v54 = vmul.u32.u64.low %v78_v47, %v73_v50  ;;  %v243_v55 = vmul.u32.u64.high %v78_v47, %v73_v50, %v242_v54  ;;  %v85_v58 = vmul.u32 %v78_v47, %v69_v56 }
  0x98   :  { %v239_v52 = vmul.u32.u64.low %v78_v47, %v77_v51  ;;  %v240_v53 = vmul.u32.u64.high %v78_v47, %v77_v51, %v239_v52 }
  0x99   :  { %v88_v57 = vadd.s32 1, %v243_v55 }
  0x9a   :  { %vm87_vm5 = vc.u32 %v240_v53, %v242_v54  ;;  %v86_v7 = vadd.s32 %v242_v54, %v240_v53 }
  0x9b   :  { %v89_v59 = vsel %vm87_vm5, %v88_v57, %v243_v55 }
  0x9c   :  { %v90_v60 = vadd.s32 %v89_v59, %v85_v58 }
  0x9e   :  { %v91_v61 = vadd.s32 536870912, %v90_v60 }
  0xa0   :  { %v92_v62 = vshrl.u32 %v91_v61, 30 }
  0xa2   :  { %v93_v63 = vshll.u32 %v92_v62, 30  ;;  %v116_v21 = vsub.s32 4, %v92_v62 }
  0xa4   :  { %v94_v0 = vsub.s32 %v90_v60, %v93_v63  ;;  %v117_v24 = vsel %vm32_vm7, %v116_v21, %v92_v62 }
  0xa5   :  { %v119_v25 = vsel %vm31_vm8, 0, %v117_v24 }
  0xa6   :  { %v96_v1 = vsub.s32 0, %v94_v0  ;;  %v123_v26 = vadd.s32 3, %v119_v25 }
  0xa8   :  { %v155_v2 = vmin.u32 %v96_v1, %v94_v0  ;;  %v124_v27 = vand.u32 3, %v123_v26 }
  0xaa   :  { %v98_v3 = vclz %v155_v2  ;;  %vm129_vm9 = vcmp.eq.s32.totalorder %v124_v27, 2  ;;  %vm126_vm10 = vcmp.eq.s32.totalorder %v124_v27, 0  ;;  %vm125_vm12 = vcmp.lt.s32.totalorder %v124_v27, 2 }
  0xac   :  { %v156_v4 = vadd.s32 4294967294, %v98_v3 }
  0xae   :  { %vm157_vm6 = vcmp.lt.s32.totalorder %v156_v4, 0 }
  0xaf   :  { %v101_v5 = vsel %vm157_vm6, 0, %v156_v4 }
  0xb0   :  { %v102_v8 = vsub.s32 32, %v101_v5  ;;  %v106_v9 = vsub.s32 4294967266, %v101_v5  ;;  %v103_v10 = vshll.u32 %v94_v0, %v101_v5 }
  0xb2   :  { %v104_v12 = vshrl.u32 %v86_v7, %v102_v8  ;;  %v107_v13 = vadd.s32 127, %v106_v9 }
  0xb4   :  { %v105_v14 = vor.u32 %v104_v12, %v103_v10  ;;  %v108_v15 = vshll.u32 %v107_v13, 23 }
  0xb6   :  { %v109_v16 = vor.u32 4788187, %v108_v15  ;;  %v112_v18 = vcvt.s32.f32 %v105_v14 }
  0xb8   :  { %v110_v17 = vand.u32 2147483647, %v109_v16 }
  0xba   :  { %v113_v19 = vmul.f32 %v112_v18, %v110_v17 }
  0xbc   :  { %v114_v20 = vxor.u32 2147483648, %v113_v19 }
  0xbe   :  { %v115_v22 = vsel %vm32_vm7, %v114_v20, %v113_v19 }
  0xbf   :  { %v118_v23 = vsel %vm31_vm8, %v233_v6, %v115_v22 }
  0xc0   :  { %173 = vcosq.f32 %v118_v23 }
  0xc1   :  { %175 = vsinq.f32 %v118_v23 }
  0xcd   :  { %v174_v28 = vpop.eup %173 }
  0xce   :  { %v176_v29 = vpop.eup %175  ;;  %v130_v30 = vxor.u32 2147483648, %v174_v28 }
  0xcf   :  { %v127_v31 = vxor.u32 2147483648, %v176_v29 }
  0xd0   :  { %v131_v32 = vsel %vm129_vm9, %v130_v30, %v176_v29 }
  0xd1   :  { %v128_v33 = vsel %vm126_vm10, %v174_v28, %v127_v31 }
  0xd2   :  { %v132_v11 = vsel %vm125_vm12, %v128_v33, %v131_v32 }
  0xd3   :  { %v133_v34 = vsel %vm122_vm13, nan, %v132_v11 }
  0xd4   :  { %135 = vst.msk [vmem:[#allocation2] sm:$0xff] %vm134_vm11, %v133_v34 }
  0xd5   :  { %140 = vsyncadd [#allocation3], 96  ;;  %s206_s0 = smov [#allocation2]  }
  0xd6   :  { %s141_s1 = sshll.u32 %s206_s0, 4  ;;  %s142_s1 = int_to_ptr.vmem [resolvable:$true] %s141_s1 }
  0xd7   :  { %s177_s15 = scalar_lea.vmem %s142_s1, 32  ;;  %s181_s16 = scalar_lea.vmem %s142_s1, 128 }
  0xd8   :  { %p178_p0 = scmp.ne.s32.totalorder %s142_s1, %s177_s15  ;;  %p182_p1 = scmp.lt.s32.totalorder %s142_s1, %s142_s1 }
  0xd9   :  { %p183_p2 = scmp.lt.s32.totalorder %s181_s16, %s177_s15 }
  0xdb   :  { %p184_p3 = por %p183_p2, %p182_p1 }
  0xdd   :  { %p185_p4 = pnand %p184_p3, %p178_p0 }
  0xdf   :  { %188 = shalt.err (!%p185_p4)
}
  0xe0   :  { %s207_s17 = smov 32   ;;  %s208_s18 = smov 2  }
  0xe1   :  { %147 = dma.vmem_to_hbm [thread:$0]  %s142_s1, 32, %s259_s2, [#allocation3], %s207_s17, %s207_s17, %s208_s18  }
  0xe2   :  { %197 = dma.done.wait [#allocation3], 128  }
  0xe3   :  { %198 = vsyncadd [#allocation3], 4294967168 }
  0xe4   :  { %151 = vsyncpa [#allocation3], 1 }

</bundles_post_ra>
